<compile_context>
chip_gen: v5e
topology: v5e:2x2
jax: 0.10.0
libtpu: 0.0.40
codegen_flags: <defaults>
</compile_context>

<pallas_src>
import math
import functools

import jax
import jax.numpy as jnp
from jax import lax
from jax.experimental import pallas as pl
from jax.experimental.pallas import tpu as pltpu

_LN_EPS = 1e-5


def _compiler_params(semantics, vmem_bytes):
    vmem = int(min(max(vmem_bytes, 8 << 20), 64 << 20))   # v7x-safe upper bound
    return pltpu.CompilerParams(dimension_semantics=semantics,
                                vmem_limit_bytes=vmem)


# ----------------------------------------------------------------------------
# Kernel 1: fused [LayerNorm] -> x @ W + b -> [GELU] -> [+ residual]
# ----------------------------------------------------------------------------
def _fused_linear_kernel(x_ref, *rest, apply_ln, activation, add_residual):
    i = 0
    if apply_ln:
        g_ref, beta_ref = rest[0], rest[1]
        i = 2
    w_ref, b_ref = rest[i], rest[i + 1]
    i += 2
    res_ref = rest[i] if add_residual else None
    o_ref = rest[i + 1] if add_residual else rest[i]

    x = x_ref[...].astype(jnp.float32)
    if apply_ln:
        mu = jnp.mean(x, axis=-1, keepdims=True)
        var = jnp.mean(jnp.square(x - mu), axis=-1, keepdims=True)
        x = (x - mu) * lax.rsqrt(var + _LN_EPS)
        x = x * g_ref[...] + beta_ref[...]
    y = jnp.dot(x, w_ref[...], preferred_element_type=jnp.float32) + b_ref[...]
    if activation == "gelu":
        # TODO(synk): PyTorch nn.GELU default is exact erf; tanh approximation
        # used here (and in the reference) for Mosaic-safe lowering.
        y = jax.nn.gelu(y, approximate=True)
    if add_residual:
        y = y + res_ref[...].astype(jnp.float32)
    o_ref[...] = y.astype(o_ref.dtype)


def fused_linear(x2d, weight, bias, *, ln_params=None, activation=None,
                 residual=None, tm=512, vmem_budget=40 << 20):
    """x2d: (M, E_in); weight pre-transposed (E_in, E_out); bias: (E_out,)."""
    M, E_in = x2d.shape
    E_out = weight.shape[1]

    # Tile budget: double-buffered x/out tiles + resident weight, f32 bytes,
    # kept under ~40 MiB so it also fits v7x's 64 MiB physical VMEM.
    while tm > 8 and 4 * (2 * tm * (E_in + E_out) + E_in * E_out) > vmem_budget:
        tm //= 2
    tm = min(tm, M)
    grid = (pl.cdiv(M, tm),)

    in_specs = [pl.BlockSpec((tm, E_in), lambda i: (i, 0))]
    args = [x2d]
    if ln_params is not None:
        g, beta = ln_params
        in_specs += [pl.BlockSpec((1, E_in), lambda i: (0, 0)),
                     pl.BlockSpec((1, E_in), lambda i: (0, 0))]
        args += [g.reshape(1, E_in), beta.reshape(1, E_in)]
    in_specs += [pl.BlockSpec((E_in, E_out), lambda i: (0, 0)),   # resident weight
                 pl.BlockSpec((1, E_out), lambda i: (0, 0))]
    args += [weight, bias.reshape(1, E_out)]
    if residual is not None:
        in_specs.append(pl.BlockSpec((tm, E_out), lambda i: (i, 0)))
        args.append(residual)

    kernel = functools.partial(
        _fused_linear_kernel,
        apply_ln=ln_params is not None,
        activation=activation,
        add_residual=residual is not None)

    vmem_bytes = 4 * (2 * tm * (E_in + E_out) + E_in * E_out
                      + 2 * E_in + E_out
                      + (2 * tm * E_out if residual is not None else 0)) + (4 << 20)
    bytes_accessed = 4 * (M * E_in + E_in * E_out + M * E_out
                          + (M * E_out if residual is not None else 0))
    cost = pl.CostEstimate(
        flops=2 * M * E_in * E_out,
        transcendentals=M * E_out if activation == "gelu" else 0,
        bytes_accessed=bytes_accessed)

    return pl.pallas_call(
        kernel,
        grid=grid,
        in_specs=in_specs,
        out_specs=pl.BlockSpec((tm, E_out), lambda i: (i, 0)),
        out_shape=jax.ShapeDtypeStruct((M, E_out), x2d.dtype),
        compiler_params=_compiler_params(("parallel",), vmem_bytes),
        cost_estimate=cost,
    )(*args)


# ----------------------------------------------------------------------------
# Kernel 2: attention core — one batch per grid step, lane-dense (L, E) output.
#   qkv block: (1, L, 3E);  mask block: (1, L, L);  output block: (1, L, E)
# ----------------------------------------------------------------------------
def _attn_kernel(qkv_ref, mask_ref, o_ref, *, num_heads, head_dim, embed_dim):
    qkv = qkv_ref[0].astype(jnp.float32)          # (L, 3E)
    invalid = mask_ref[0] == 0                    # (L, L)
    scale = 1.0 / math.sqrt(head_dim)

    outs = []
    for h in range(num_heads):                    # static unroll over heads
        lo = h * head_dim
        q = qkv[:, lo:lo + head_dim]
        k = qkv[:, embed_dim + lo:embed_dim + lo + head_dim]
        v = qkv[:, 2 * embed_dim + lo:2 * embed_dim + lo + head_dim]
        # contract last dims directly — no explicit k.T (XLU) transpose
        s = lax.dot_general(q, k, (((1,), (1,)), ((), ())),
                            preferred_element_type=jnp.float32) * scale
        # finite large-negative mask value avoids NaN on fully-masked rows
        s = jnp.where(invalid, jnp.float32(-1e30), s)
        m = jnp.max(s, axis=-1, keepdims=True)
        e = jnp.exp(s - m)
        denom = jnp.sum(e, axis=-1, keepdims=True)
        p = e * pl.reciprocal(denom, approx=False)
        outs.append(jnp.dot(p, v, preferred_element_type=jnp.float32))
    # single lane-dense store of the full (L, E) tile
    o_ref[0] = jnp.concatenate(outs, axis=-1).astype(o_ref.dtype)


def attention_core(qkv, attn_mask, num_heads):
    """qkv: (N, L, 3E); attn_mask: (N, L, L) -> (N, L, E)."""
    N, L, E3 = qkv.shape
    E = E3 // 3
    D = E // num_heads
    kernel = functools.partial(_attn_kernel, num_heads=num_heads,
                               head_dim=D, embed_dim=E)
    vmem_bytes = 4 * (2 * (L * E3 + L * L + L * E) + 4 * L * L + 2 * L * E) + (4 << 20)
    cost = pl.CostEstimate(
        flops=4 * N * num_heads * L * L * D,
        transcendentals=N * num_heads * L * L,
        bytes_accessed=4 * N * (L * E3 + L * L + L * E))
    return pl.pallas_call(
        kernel,
        grid=(N,),
        in_specs=[pl.BlockSpec((1, L, E3), lambda b: (b, 0, 0)),
                  pl.BlockSpec((1, L, L), lambda b: (b, 0, 0))],
        out_specs=pl.BlockSpec((1, L, E), lambda b: (b, 0, 0)),
        out_shape=jax.ShapeDtypeStruct((N, L, E), qkv.dtype),
        compiler_params=_compiler_params(("parallel",), vmem_bytes),
        cost_estimate=cost,
    )(qkv, attn_mask)


# ----------------------------------------------------------------------------
# Module-level forward (mirrors Transformer.forward, norm_first=True, inference)
# ----------------------------------------------------------------------------
def transformer_forward(params, src, attn_mask, num_heads):
    N, L, E = src.shape
    x = src.reshape(N * L, E)
    for layer in params["layers"]:
        # --- self-attention block: x = x + out_proj(attn(qkv(LN1(x)))) ---
        qkv = fused_linear(x, layer["qkv_w"], layer["qkv_b"],
                           ln_params=(layer["ln1_g"], layer["ln1_b"]))
        attn = attention_core(qkv.reshape(N, L, 3 * E), attn_mask, num_heads)
        x = fused_linear(attn.reshape(N * L, E), layer["o_w"], layer["o_b"],
                         residual=x)
        # --- feed-forward block: x = x + ff2(gelu(ff1(LN2(x)))) ---
        h = fused_linear(x, layer["ff1_w"], layer["ff1_b"],
                         ln_params=(layer["ln2_g"], layer["ln2_b"]),
                         activation="gelu")
        x = fused_linear(h, layer["ff2_w"], layer["ff2_b"], residual=x)
    return x.reshape(N, L, E)


def init_params(key, num_layers, d_model, dim_feedforward):
    layers = []
    for lk in jax.random.split(key, num_layers):
        kq, ko, k1, k2 = jax.random.split(lk, 4)

        def w(k, fan_in, fan_out):
            # stored pre-transposed (fan_in, fan_out): no weight.T in wrappers
            return 0.02 * jax.random.normal(k, (fan_in, fan_out), dtype=jnp.float32)

        layers.append(dict(
            qkv_w=w(kq, d_model, 3 * d_model),
            qkv_b=jnp.zeros((3 * d_model,), jnp.float32),
            o_w=w(ko, d_model, d_model), o_b=jnp.zeros((d_model,), jnp.float32),
            ff1_w=w(k1, d_model, dim_feedforward),
            ff1_b=jnp.zeros((dim_feedforward,), jnp.float32),
            ff2_w=w(k2, dim_feedforward, d_model),
            ff2_b=jnp.zeros((d_model,), jnp.float32),
            ln1_g=jnp.ones((d_model,), jnp.float32),
            ln1_b=jnp.zeros((d_model,), jnp.float32),
            ln2_g=jnp.ones((d_model,), jnp.float32),
            ln2_b=jnp.zeros((d_model,), jnp.float32),
        ))
    return dict(layers=layers)


# ----------------------------------------------------------------------------
# Reference (plain JAX) for a sanity check
# ----------------------------------------------------------------------------
def reference_forward(params, src, attn_mask, num_heads):
    N, L, E = src.shape
    D = E // num_heads

    def ln(x, g, b):
        mu = jnp.mean(x, axis=-1, keepdims=True)
        var = jnp.mean(jnp.square(x - mu), axis=-1, keepdims=True)
        return (x - mu) / jnp.sqrt(var + _LN_EPS) * g + b

    x = src
    for layer in params["layers"]:
        h = ln(x, layer["ln1_g"], layer["ln1_b"])
        qkv = h @ layer["qkv_w"] + layer["qkv_b"]
        q, k, v = jnp.split(qkv, 3, axis=-1)

        def heads(t):
            return t.reshape(N, L, num_heads, D).transpose(0, 2, 1, 3)

        q, k, v = heads(q), heads(k), heads(v)
        s = jnp.einsum("nhld,nhmd->nhlm", q, k) / math.sqrt(D)
        s = jnp.where(attn_mask[:, None] == 0, -1e30, s)
        w = jax.nn.softmax(s, axis=-1)
        o = jnp.einsum("nhlm,nhmd->nhld", w, v)
        o = o.transpose(0, 2, 1, 3).reshape(N, L, E)
        x = x + o @ layer["o_w"] + layer["o_b"]
        h2 = ln(x, layer["ln2_g"], layer["ln2_b"])
        f = jax.nn.gelu(h2 @ layer["ff1_w"] + layer["ff1_b"], approximate=True)
        x = x + f @ layer["ff2_w"] + layer["ff2_b"]
    return x


if __name__ == "__main__":
    num_layers, N, L, E, H, FF = 2, 2, 8, 32, 4, 64

    key = jax.random.PRNGKey(0)
    kp, kx = jax.random.split(key)
    params = init_params(kp, num_layers, E, FF)
    src = jax.random.normal(kx, (N, L, E), dtype=jnp.float32)

    # causal mask (generate_square_subsequent_mask): 1 = attend, 0 = ignore
    causal = jnp.tril(jnp.ones((L, L), dtype=jnp.float32))
    attn_mask = jnp.broadcast_to(causal, (N, L, L))

    out = transformer_forward(params, src, attn_mask, H)
    out = jax.block_until_ready(out)

    ref = reference_forward(params, src, attn_mask, H)
    assert out.shape == (N, L, E)
    err = float(jnp.max(jnp.abs(out - ref)))
    assert jnp.allclose(out, ref, atol=1e-4, rtol=1e-4), f"max abs err {err}"

    print("KERNEL_OK")
</pallas_src>

<mosaic_0001>
module attributes {stable_mosaic.version = 11 : i64} {
  func.func @_fused_linear_kernel(%arg0: i32, %arg1: memref<16x32xf32, #tpu.memory_space<vmem>>, %arg2: memref<1x32xf32, #tpu.memory_space<vmem>>, %arg3: memref<1x32xf32, #tpu.memory_space<vmem>>, %arg4: memref<32x96xf32, #tpu.memory_space<vmem>>, %arg5: memref<1x96xf32, #tpu.memory_space<vmem>>, %arg6: memref<16x96xf32, #tpu.memory_space<vmem>>) attributes {dimension_semantics = [#tpu.dimension_semantics<parallel>], iteration_bounds = array<i64: 1>, scalar_prefetch = 0 : i64, scratch_operands = 0 : i64, tpu.core_type = #tpu.core_type<tc>, window_params = [{transform_indices = @transform_0, window_bounds = array<i64: 16, 32>}, {pipeline_mode = #tpu.pipeline_mode<synchronous>, transform_indices = @transform_1, window_bounds = array<i64: 1, 32>}, {pipeline_mode = #tpu.pipeline_mode<synchronous>, transform_indices = @transform_2, window_bounds = array<i64: 1, 32>}, {pipeline_mode = #tpu.pipeline_mode<synchronous>, transform_indices = @transform_3, window_bounds = array<i64: 32, 96>}, {pipeline_mode = #tpu.pipeline_mode<synchronous>, transform_indices = @transform_4, window_bounds = array<i64: 1, 96>}, {transform_indices = @transform_5, window_bounds = array<i64: 16, 96>}]} {
    %c0 = arith.constant 0 : index
    %c0_0 = arith.constant 0 : index
    %0 = vector.load %arg1[%c0, %c0_0] : memref<16x32xf32, #tpu.memory_space<vmem>>, vector<16x32xf32>
    %cst = arith.constant dense<0.000000e+00> : vector<16xf32>
    %1 = vector.multi_reduction <add>, %0, %cst [1] : vector<16x32xf32> to vector<16xf32>
    %2 = vector.shape_cast %1 : vector<16xf32> to vector<16x1xf32>
    %cst_1 = arith.constant 3.200000e+01 : f32
    %3 = vector.broadcast %cst_1 : f32 to vector<16x1xf32>
    %4 = arith.divf %2, %3 : vector<16x1xf32>
    %5 = vector.broadcast %4 : vector<16x1xf32> to vector<16x32xf32>
    %6 = arith.subf %0, %5 : vector<16x32xf32>
    %7 = arith.mulf %6, %6 : vector<16x32xf32>
    %cst_2 = arith.constant dense<0.000000e+00> : vector<16xf32>
    %8 = vector.multi_reduction <add>, %7, %cst_2 [1] : vector<16x32xf32> to vector<16xf32>
    %9 = vector.shape_cast %8 : vector<16xf32> to vector<16x1xf32>
    %cst_3 = arith.constant 3.200000e+01 : f32
    %10 = vector.broadcast %cst_3 : f32 to vector<16x1xf32>
    %11 = arith.divf %9, %10 : vector<16x1xf32>
    %12 = vector.broadcast %4 : vector<16x1xf32> to vector<16x32xf32>
    %13 = arith.subf %0, %12 : vector<16x32xf32>
    %cst_4 = arith.constant 9.99999974E-6 : f32
    %14 = vector.broadcast %cst_4 : f32 to vector<16x1xf32>
    %15 = arith.addf %11, %14 : vector<16x1xf32>
    %16 = math.rsqrt %15 : vector<16x1xf32>
    %17 = vector.broadcast %16 : vector<16x1xf32> to vector<16x32xf32>
    %18 = arith.mulf %13, %17 : vector<16x32xf32>
    %c0_5 = arith.constant 0 : index
    %c0_6 = arith.constant 0 : index
    %19 = vector.load %arg2[%c0_5, %c0_6] : memref<1x32xf32, #tpu.memory_space<vmem>>, vector<1x32xf32>
    %20 = vector.broadcast %19 : vector<1x32xf32> to vector<16x32xf32>
    %21 = arith.mulf %18, %20 : vector<16x32xf32>
    %c0_7 = arith.constant 0 : index
    %c0_8 = arith.constant 0 : index
    %22 = vector.load %arg3[%c0_7, %c0_8] : memref<1x32xf32, #tpu.memory_space<vmem>>, vector<1x32xf32>
    %23 = vector.broadcast %22 : vector<1x32xf32> to vector<16x32xf32>
    %24 = arith.addf %21, %23 : vector<16x32xf32>
    %c0_9 = arith.constant 0 : index
    %c0_10 = arith.constant 0 : index
    %25 = vector.load %arg4[%c0_9, %c0_10] : memref<32x96xf32, #tpu.memory_space<vmem>>, vector<32x96xf32>
    %cst_11 = arith.constant dense<0.000000e+00> : vector<16x96xf32>
    %26 = tpu.matmul %24, %25, %cst_11 {dimension_numbers = #tpu.dot_dimension_numbers<[1], [0], [0], [1], [0, 0, 1, 1], [], []>} : vector<16x32xf32>, vector<32x96xf32>, vector<16x96xf32> -> vector<16x96xf32>
    %c0_12 = arith.constant 0 : index
    %c0_13 = arith.constant 0 : index
    %27 = vector.load %arg5[%c0_12, %c0_13] : memref<1x96xf32, #tpu.memory_space<vmem>>, vector<1x96xf32>
    %28 = vector.broadcast %27 : vector<1x96xf32> to vector<16x96xf32>
    %29 = arith.addf %26, %28 : vector<16x96xf32>
    %c0_14 = arith.constant 0 : index
    %c0_15 = arith.constant 0 : index
    %30 = vector.load %arg6[%c0_14, %c0_15] : memref<16x96xf32, #tpu.memory_space<vmem>>, vector<16x96xf32>
    tpu.vector_store %arg6[%c0_14, %c0_15], %29 {strides = array<i32>} : memref<16x96xf32, #tpu.memory_space<vmem>>, vector<16x96xf32>,
    return
  }
  func.func @transform_0(%arg0: i32) -> (i32, i32) {
    %c0_i32 = arith.constant 0 : i32
    %c0_i32_0 = arith.constant 0 : i32
    return %arg0, %c0_i32 : i32, i32
  }
  func.func @transform_1(%arg0: i32) -> (i32, i32) {
    %c0_i32 = arith.constant 0 : i32
    %c0_i32_0 = arith.constant 0 : i32
    %c0_i32_1 = arith.constant 0 : i32
    return %c0_i32, %c0_i32_0 : i32, i32
  }
  func.func @transform_2(%arg0: i32) -> (i32, i32) {
    %c0_i32 = arith.constant 0 : i32
    %c0_i32_0 = arith.constant 0 : i32
    %c0_i32_1 = arith.constant 0 : i32
    return %c0_i32, %c0_i32_0 : i32, i32
  }
  func.func @transform_3(%arg0: i32) -> (i32, i32) {
    %c0_i32 = arith.constant 0 : i32
    %c0_i32_0 = arith.constant 0 : i32
    %c0_i32_1 = arith.constant 0 : i32
    return %c0_i32, %c0_i32_0 : i32, i32
  }
  func.func @transform_4(%arg0: i32) -> (i32, i32) {
    %c0_i32 = arith.constant 0 : i32
    %c0_i32_0 = arith.constant 0 : i32
    %c0_i32_1 = arith.constant 0 : i32
    return %c0_i32, %c0_i32_0 : i32, i32
  }
  func.func @transform_5(%arg0: i32) -> (i32, i32) {
    %c0_i32 = arith.constant 0 : i32
    %c0_i32_0 = arith.constant 0 : i32
    return %arg0, %c0_i32 : i32, i32
  }
}

</mosaic_0001>

<bundles_post_ra>
// kernel: tpu_custom_call.1
= control target key start
LH: loop header
LB: loop body
LE: loop exit
PB: predicated region body
PF: predicated region fallthrough
CT: control target
= control target key end

     0   :  { %10 = vsyncpa [#allocation3], 0  ;;  %s386_s0 = inlined_call_operand.hbm [shape: f32[16,32], index: 0, kind: input, shape index: {}]   ;;  %s387_s1 = inlined_call_operand.hbm [shape: f32[1,32], index: 1, kind: input, shape index: {}]   ;;  %s388_s2 = inlined_call_operand.vmem [shape: f32[1,32], index: 2, kind: input, shape index: {}]   ;;  %s389_s3 = inlined_call_operand.hbm [shape: f32[32,96], index: 3, kind: input, shape index: {}]   ;;  %s390_s4 = inlined_call_operand.vmem [shape: f32[1,96], index: 4, kind: input, shape index: {}]   ;;  %s391_s5 = inlined_call_operand.hbm [shape: f32[16,96], index: 5, kind: output, shape index: {}]  }
   0x1   :  { %11 = vsyncpa [#allocation6], 0  ;;  %s31_s20 = sshll.u32 %s387_s1, 4  ;;  %s32_s20 = int_to_ptr.hbm [resolvable:$true] %s31_s20 }
   0x2   :  { %12 = vsyncpa [#allocation4], 0  ;;  %s316_s21 = smov [#allocation5]   ;;  %s17_s25 = sshll.u32 %s386_s0, 4  ;;  %s18_s25 = int_to_ptr.hbm [resolvable:$true] %s17_s25 }
   0x3   :  { %s33_s22 = sshll.u32 %s316_s21, 4  ;;  %s317_s26 = smov [#allocation2]   ;;  %s34_s22 = int_to_ptr.vmem [resolvable:$true] %s33_s22 }
   0x4   :  { %36 = dma.hbm_to_vmem [thread:$0]  %s32_s20, 16, %s34_s22, [#allocation6]  }
   0x5   :  { %s19_s27 = sshll.u32 %s317_s26, 4  ;;  %s318_s28 = smov 128   ;;  %s20_s27 = int_to_ptr.vmem [resolvable:$true] %s19_s27 }
   0x6   :  { %s319_s29 = smov 8   ;;  %s43_s6 = sshll.u32 %s389_s3, 4  ;;  %s44_s6 = int_to_ptr.hbm [resolvable:$true] %s43_s6 }
   0x7   :  { %25 = dma.hbm_to_vmem [thread:$0]  %s18_s25, 256, %s20_s27, [#allocation3], %s318_s28, %s318_s28, %s319_s29  }
   0x8   :  { %s320_s7 = smov [#allocation7]  }
   0x9   :  { %s45_s8 = sshll.u32 %s320_s7, 4  ;;  %s46_s8 = int_to_ptr.vmem [resolvable:$true] %s45_s8 }
   0xa   :  { %51 = dma.hbm_to_vmem [thread:$0]  %s44_s6, 512, %s46_s8, [#allocation6], %s318_s28, %s318_s28, %s319_s29  }
   0xb   :  { %310 = dma.done.wait [#allocation3], 256  }
   0xc   :  { %311 = vsyncadd [#allocation3], 4294967040 }
   0xd   :  { %312 = dma.done.wait [#allocation6], 528  }
   0xe   :  { %313 = vsyncadd [#allocation6], 4294966768  ;;  %vm68_vm0 = vcmask 261120   ;;  %v66_v0 = vld [vmem:[#allocation2] sm:$0xff]  ;;  %v67_v2 = vld [vmem:[#allocation2 + $0x8] sm:$0xff]  ;;  %v321_v4 = vmov 32.0  }
   0xf   :  { %v69_v1 = vsel %vm68_vm0, %v66_v0, 0.0  ;;  %v72_v3 = vsel %vm68_vm0, %v67_v2, 0.0  ;;  %208 = vrcp.f32 %v321_v4  ;;  %v135_v21 = vld [vmem:[#allocation7 + $0x18] sm:$0xff]  ;;  %v134_v22 = vld [vmem:[#allocation7 + $0x10] sm:$0xff]  ;;  %v133_v23 = vld [vmem:[#allocation7 + $0x8] sm:$0xff]  ;;  %vm169_vm8 = vcmask 785408  }
  0x10   :  { %70 = vadd.xlane.f32.xlu0 %v69_v1  ;;  %158 = vmatpush.msra.mxu0 %v135_v21  ;;  %v132_v24 = vld [vmem:[#allocation7] sm:$0xff]  ;;  %v205_v39 = vld [vmem:[#allocation5] ss:$0 sm:$0xff]  ;;  %v206_v43 = vld [vmem:[%s388_s2] ss:$0 sm:$0xff]  ;;  %s322_s2 = smov [#allocation8]  }
  0x11   :  { %194 = vmatpush.msra.mxu1 %v135_v21  ;;  %v207_v53 = vld [vmem:[%s390_s4] ss:$0 sm:$0xff]  ;;  %s176_s11 = sshll.u32 %s322_s2, 4  ;;  %s178_s14 = sshll.u32 %s391_s5, 4  ;;  %s177_s11 = int_to_ptr.vmem [resolvable:$true] %s176_s11  ;;  %s179_s14 = int_to_ptr.hbm [resolvable:$true] %s178_s14 }
  0x12   :  { %159 = vmatpush.msra.mxu0 %v134_v22 }
  0x13   :  { %195 = vmatpush.msra.mxu1 %v134_v22 }
  0x14   :  { %160 = vmatpush.msra.mxu0 %v133_v23 }
  0x15   :  { %v209_v5 = vpop.eup %208  ;;  %196 = vmatpush.msra.mxu1 %v133_v23 }
  0x16   :  { %v76_v6 = vmul.f32 32.0, %v209_v5  ;;  %vm80_vm1 = vweird.f32 %v209_v5  ;;  %161 = vmatpush.msra.mxu0 %v132_v24 }
  0x17   :  { %197 = vmatpush.msra.mxu1 %v132_v24 }
  0x18   :  { %73 = vadd.xlane.f32.xlu0 %v72_v3  ;;  %v77_v7 = vsub.f32 1.0, %v76_v6 }
  0x1a   :  { %v78_v8 = vmul.f32 %v209_v5, %v77_v7 }
  0x1c   :  { %v79_v9 = vadd.f32 %v209_v5, %v78_v8 }
  0x1e   :  { %v81_v10 = vsel %vm80_vm1, %v209_v5, %v79_v9 }
  0x83   :  { %v71_v11 = vpop.xlane.xlu0 %70 }
  0x84   :  { %v82_v12 = vmul.f32 %v81_v10, %v71_v11 }
  0x86   :  { %v84_v13 = vsub.f32 %v66_v0, %v82_v12 }
  0x88   :  { %v86_v14 = vmul.f32 %v84_v13, %v84_v13 }
  0x8a   :  { %v88_v15 = vsel %vm68_vm0, %v86_v14, 0.0 }
  0x8b   :  { %89 = vadd.xlane.f32.xlu1 %v88_v15  ;;  %v74_v16 = vpop.xlane.xlu0 %73 }
  0x8c   :  { %v83_v17 = vmul.f32 %v81_v10, %v74_v16 }
  0x8e   :  { %v85_v18 = vsub.f32 %v67_v2, %v83_v17 }
  0x90   :  { %v87_v19 = vmul.f32 %v85_v18, %v85_v18 }
  0x92   :  { %v91_v20 = vsel %vm68_vm0, %v87_v19, 0.0 }
  0x93   :  { %92 = vadd.xlane.f32.xlu1 %v91_v20 }
  0xfe   :  { %v90_v25 = vpop.xlane.xlu1 %89 }
  0xff   :  { %v94_v26 = vmul.f32 %v90_v25, %v81_v10 }
 0x101   :  { %v96_v27 = vadd.f32 1e-05, %v94_v26 }
 0x103   :  { %210 = vrsqrt.f32 %v96_v27  ;;  %vm104_vm3 = vweird.f32 %v96_v27 }
 0x106   :  { %v93_v28 = vpop.xlane.xlu1 %92 }
 0x107   :  { %v95_v29 = vmul.f32 %v93_v28, %v81_v10 }
 0x109   :  { %v211_v30 = vpop.eup %210  ;;  %v97_v31 = vadd.f32 1e-05, %v95_v29 }
 0x10a   :  { %v99_v32 = vmul.f32 %v211_v30, %v96_v27  ;;  %vm105_vm2 = vweird.f32 %v211_v30 }
 0x10b   :  { %212 = vrsqrt.f32 %v97_v31  ;;  %vm106_vm4 = vmor %vm104_vm3, %vm105_vm2  ;;  %vm114_vm6 = vweird.f32 %v97_v31 }
 0x10c   :  { %v100_v33 = vmul.f32 %v211_v30, %v99_v32 }
 0x10e   :  { %v101_v34 = vmul.f32 0.5, %v100_v33 }
 0x110   :  { %v102_v35 = vsub.f32 1.5, %v101_v34 }
 0x111   :  { %v213_v36 = vpop.eup %212 }
 0x112   :  { %v103_v37 = vmul.f32 %v211_v30, %v102_v35  ;;  %v109_v38 = vmul.f32 %v213_v36, %v97_v31  ;;  %vm115_vm5 = vweird.f32 %v213_v36 }
 0x113   :  { %vm116_vm7 = vmor %vm114_vm6, %vm115_vm5 }
 0x114   :  { %v107_v40 = vsel %vm106_vm4, %v211_v30, %v103_v37  ;;  %v110_v41 = vmul.f32 %v213_v36, %v109_v38 }
 0x115   :  { %v118_v42 = vmul.f32 %v107_v40, %v84_v13 }
 0x116   :  { %v111_v44 = vmul.f32 0.5, %v110_v41 }
 0x117   :  { %v124_v45 = vmul.f32 %v205_v39, %v118_v42 }
 0x118   :  { %v112_v46 = vsub.f32 1.5, %v111_v44 }
 0x119   :  { %v130_v47 = vadd.f32 %v206_v43, %v124_v45 }
 0x11a   :  { %v113_v48 = vmul.f32 %v213_v36, %v112_v46 }
 0x11b   :  { %192 = vmatmul.msk.f32.vlgmr.msra.gmra.mxu0 %vm68_vm0, %v130_v47 }
 0x11c   :  { %v117_v49 = vsel %vm116_vm7, %v213_v36, %v113_v48 }
 0x11d   :  { %v119_v50 = vmul.f32 %v117_v49, %v85_v18 }
 0x11f   :  { %v125_v51 = vmul.f32 %v205_v39, %v119_v50 }
 0x121   :  { %v131_v52 = vadd.f32 %v206_v43, %v125_v51 }
 0x123   :  { %193 = vmatmul.msk.f32.vlgmr.msra.gmra.mxu1 %vm68_vm0, %v131_v52 }
 0x198   :  { %v163_v54 = vpop.f32.mrf.mxu0 }
 0x199   :  { %v164_v55 = vadd.f32 %v207_v53, %v163_v54 }
 0x19b   :  { %170 = vst.msk [vmem:[#allocation8] sm:$0xff] %vm169_vm8, %v164_v55 }
 0x1a0   :  { %v166_v56 = vpop.f32.mrf.mxu1 }
 0x1a1   :  { %v167_v57 = vadd.f32 %v207_v53, %v166_v56 }
 0x1a3   :  { %171 = vst.msk [vmem:[#allocation8 + $0x8] sm:$0xff] %vm169_vm8, %v167_v57 }
 0x1a4   :  { %184 = dma.vmem_to_hbm [thread:$0]  %s177_s11, 256, %s179_s14, [#allocation4], %s318_s28, %s318_s28, %s319_s29  }
 0x1a5   :  { %314 = dma.done.wait [#allocation4], 256  }
 0x1a6   :  { %315 = vsyncadd [#allocation4], 4294967040 }
 0x1a7   :  { %189 = vsyncpa [#allocation3], 1 }
 0x1a8   :  { %190 = vsyncpa [#allocation6], 1 }
 0x1a9   :  { %191 = vsyncpa [#allocation4], 1 }

</bundles_post_ra>
